<compile_context>
chip_gen: v7x
topology: tpu7x:2x2x1
jax: 0.10.0
libtpu: 0.0.40
codegen_flags: <defaults>
</compile_context>

<pallas_src>
import functools

import jax
import jax.numpy as jnp
from jax import lax
from jax.experimental import pallas as pl
from jax.experimental.pallas import tpu as pltpu

GAMMA = 0.1
EPSILON = 1e-6

_LANES = 128
_SUBLANES = 8
_CHUNK_ROWS = 128          # rows per inner chunk: (128,128) f32 = 64 KiB = 16 vregs


def _round_up(x, m):
    return ((x + m - 1) // m) * m


def _device_kind():
    try:
        return jax.devices()[0].device_kind.lower()
    except Exception:  # pragma: no cover - defensive
        return ""


def _default_num_splits():
    # Only v7x has 2 TensorCores per chip; on v5e/v6e a split is pure
    # overhead (forced tail masking + possible redundant clamped block).
    return 2 if "v7" in _device_kind() else 1


def _default_block_bytes():
    kind = _device_kind()
    if "v7" in kind:
        return 8 * 1024 * 1024   # 3.2 TB/s HBM -> amortize ~0.35us/step overhead
    if "v6" in kind:
        return 4 * 1024 * 1024   # 32 MiB scoped VMEM default, plenty of headroom
    return 2 * 1024 * 1024       # v5e: 16 MiB scoped VMEM default


def _partial_sum_kernel(mask_ref, out_ref, *, rows, row_block, chunk_rows,
                        blocks_per_split, total_blocks, need_row_mask):
    """Accumulate per-(sublane, lane) partial sums of one mask row-tile.

    mask_ref : VMEM (row_block, 128), native mask dtype  -- current tile
    out_ref  : VMEM (8, 128) f32 -- this split's partial sums (resident
               accumulator across the reduction axis)
    """
    s = pl.program_id(0)   # split axis ("parallel", 2-way on v7x)
    j = pl.program_id(1)   # reduction axis ("arbitrary")
    blk = s * blocks_per_split + j   # logical (unclamped) block id

    @pl.when(j == 0)
    def _():
        out_ref[...] = jnp.zeros_like(out_ref)

    num_chunks = row_block // chunk_rows
    cols = out_ref.shape[-1]

    def accumulate(masked):
        def body(c, acc):
            r0 = pl.multiple_of(c * chunk_rows, chunk_rows)
            chunk = mask_ref[pl.ds(r0, chunk_rows), :].astype(jnp.float32)
            if masked:
                # Rows at/after `rows` are OOB garbage of a partial last block
                # or a redundant clamped re-read -> zero them.
                row0 = blk * row_block + r0
                rid = lax.broadcasted_iota(jnp.int32, chunk.shape, 0) + row0
                chunk = jnp.where(rid < rows, chunk, 0.0)
            # VALU-only sublane fold down to one (8, cols) slab.
            return acc + chunk.reshape(chunk_rows // _SUBLANES, _SUBLANES,
                                       cols).sum(axis=0)

        acc = lax.fori_loop(0, num_chunks, body,
                            jnp.zeros((_SUBLANES, cols), jnp.float32),
                            unroll=min(num_chunks, 8))
        out_ref[...] += acc

    if need_row_mask:
        # Only the last real block and redundant clamped blocks pay for the
        # mask; interior blocks take the unmasked fast path.
        @pl.when(blk < total_blocks - 1)
        def _():
            accumulate(False)

        @pl.when(blk >= total_blocks - 1)
        def _():
            accumulate(True)
    else:
        accumulate(False)


def size_consistency_loss(mask, s_label, *, gamma=GAMMA, epsilon=EPSILON,
                          block_bytes=None, row_block=None, num_splits=None):
    """mask: any-shape real array (NCHW at the call site), native dtype.
    s_label: scalar target size.  Returns scalar f32 loss."""
    mask = jnp.asarray(mask)
    n = mask.size
    elem_bytes = jnp.dtype(mask.dtype).itemsize
    # Sub-32-bit dtypes pack 2/4 rows per sublane; align rows to the packed tile.
    pack_rows = _SUBLANES * max(1, 4 // max(1, elem_bytes))

    # Lane-dense (rows, 128) view: pad the flat mask with zeros up to a
    # multiple of pack_rows*128 elements (tiny one-off XLA pad).
    flat = mask.reshape(-1)
    padded_n = _round_up(n, pack_rows * _LANES)
    if padded_n != n:
        flat = jnp.pad(flat, (0, padded_n - n))
    cols = _LANES
    rows = padded_n // cols
    mask_2d = flat.reshape(rows, cols)

    if block_bytes is None:
        block_bytes = _default_block_bytes()
    if row_block is None:
        row_block = max(pack_rows, block_bytes // (elem_bytes * cols))
    row_block = min(row_block, rows)
    row_block = max(pack_rows, (row_block // pack_rows) * pack_rows)
    chunk_rows = min(row_block, _CHUNK_ROWS)
    row_block = max(chunk_rows, (row_block // chunk_rows) * chunk_rows)

    total_blocks = pl.cdiv(rows, row_block)
    if num_splits is None:
        num_splits = _default_num_splits()
    num_splits = max(1, min(num_splits, total_blocks))
    blocks_per_split = pl.cdiv(total_blocks, num_splits)
    # Tail masking is only needed when the grid's logical coverage exceeds the
    # (padded) row count: a partial last block and/or a redundant clamped
    # block when total_blocks is not a multiple of num_splits.
    need_row_mask = (num_splits * blocks_per_split * row_block) != rows

    def mask_index_map(s, j):
        blk = s * blocks_per_split + j
        # Clamp so redundant trailing blocks re-read the last real block
        # (their contribution is zeroed in-kernel via logical row ids).
        return (jnp.minimum(blk, total_blocks - 1), 0)

    kernel = functools.partial(
        _partial_sum_kernel,
        rows=rows, row_block=row_block, chunk_rows=chunk_rows,
        blocks_per_split=blocks_per_split, total_blocks=total_blocks,
        need_row_mask=need_row_mask)

    cost = pl.CostEstimate(
        flops=int(padded_n),
        transcendentals=0,
        bytes_accessed=int(padded_n) * elem_bytes + num_splits * _SUBLANES * cols * 4)

    partials = pl.pallas_call(
        kernel,
        out_shape=jax.ShapeDtypeStruct((num_splits * _SUBLANES, cols),
                                       jnp.float32),
        grid_spec=pltpu.PrefetchScalarGridSpec(
            num_scalar_prefetch=0,
            grid=(num_splits, blocks_per_split),
            in_specs=[pl.BlockSpec((row_block, cols), mask_index_map)],
            out_specs=pl.BlockSpec((_SUBLANES, cols), lambda s, j: (s, 0)),
        ),
        compiler_params=pltpu.CompilerParams(
            dimension_semantics=(pltpu.PARALLEL, pltpu.ARBITRARY),
            vmem_limit_bytes=32 * 1024 * 1024),
        cost_estimate=cost,
    )(mask_2d)

    # Tiny epilogue on the (num_splits*8, 128) partial-sum slab.
    predicted_size = jnp.sum(partials)
    s_label = jnp.asarray(s_label, dtype=jnp.float32)
    loss = jnp.abs((predicted_size - s_label) / (s_label + jnp.float32(epsilon)))
    return jnp.float32(gamma) * loss


def _reference(mask, s_label, gamma=GAMMA, epsilon=EPSILON):
    predicted_size = jnp.sum(mask.astype(jnp.float32))
    return gamma * jnp.abs((predicted_size - s_label) / (s_label + epsilon))


if __name__ == "__main__":
    key = jax.random.PRNGKey(0)
    k_mask, k_mask2, k_label = jax.random.split(key, 3)

    # NCHW soft segmentation mask in [0, 1].
    mask = jax.random.uniform(k_mask, (2, 4, 16, 16), dtype=jnp.float32)
    # Target size label (scalar).
    s_label = jnp.float32(1000.0) + jax.random.uniform(
        k_label, (), dtype=jnp.float32) * 10.0

    # 1) Default tiling (single block, no padding needed).
    ref = _reference(mask, s_label)
    loss = jax.block_until_ready(size_consistency_loss(mask, s_label))
    assert jnp.allclose(loss, ref, rtol=1e-5, atol=1e-6), (loss, ref)

    # 2) Ragged element count -> wrapper pad path, plus tiny row_block and a
    #    forced 2-way split to exercise the tail mask and the redundant
    #    clamped block (correct on any chip; perf-relevant only on v7x).
    mask_ragged = jax.random.uniform(k_mask2, (2, 4, 20, 16), dtype=jnp.float32)
    ref2 = _reference(mask_ragged, s_label)
    loss2 = jax.block_until_ready(
        size_consistency_loss(mask_ragged, s_label, row_block=8, num_splits=2))
    assert jnp.allclose(loss2, ref2, rtol=1e-5, atol=1e-6), (loss2, ref2)

    # 3) bf16 mask -> exercises the dtype-packing-aligned (16-row) blocks.
    mask_bf16 = mask.astype(jnp.bfloat16)
    ref3 = _reference(mask_bf16, s_label)
    loss3 = jax.block_until_ready(size_consistency_loss(mask_bf16, s_label))
    assert jnp.allclose(loss3, ref3, rtol=1e-5, atol=1e-6), (loss3, ref3)

    print("KERNEL_OK")
</pallas_src>

<mosaic_0001>
module attributes {stable_mosaic.version = 11 : i64} {
  func.func @_partial_sum_kernel(%arg0: i32, %arg1: i32, %arg2: memref<16x128xf32, #tpu.memory_space<vmem>>, %arg3: memref<8x128xf32, #tpu.memory_space<vmem>>) attributes {dimension_semantics = [#tpu.dimension_semantics<parallel>, #tpu.dimension_semantics<arbitrary>], iteration_bounds = array<i64: 1, 1>, scalar_prefetch = 0 : i64, scratch_operands = 0 : i64, tpu.core_type = #tpu.core_type<tc>, window_params = [{transform_indices = @transform_0, window_bounds = array<i64: 16, 128>}, {transform_indices = @transform_1, window_bounds = array<i64: 8, 128>}]} {
    %c0_i32 = arith.constant 0 : i32
    %0 = arith.cmpi eq, %arg1, %c0_i32 : i32
    %1 = arith.extui %0 : i1 to i32
    %c0_i32_0 = arith.constant 0 : i32
    %2 = arith.cmpi ne, %1, %c0_i32_0 : i32
    scf.if %2 {
      %cst_7 = arith.constant 0.000000e+00 : f32
      %14 = vector.broadcast %cst_7 : f32 to vector<8x128xf32>
      %c0_8 = arith.constant 0 : index
      %c0_9 = arith.constant 0 : index
      %15 = vector.load %arg3[%c0_8, %c0_9] : memref<8x128xf32, #tpu.memory_space<vmem>>, vector<8x128xf32>
      tpu.vector_store %arg3[%c0_8, %c0_9], %14 {strides = array<i32>} : memref<8x128xf32, #tpu.memory_space<vmem>>, vector<8x128xf32>,
    } else {
    }
    %cst = arith.constant 0.000000e+00 : f32
    %3 = vector.broadcast %cst : f32 to vector<8x128xf32>
    %c0_i32_1 = arith.constant 0 : i32
    %c16_i32 = arith.constant 16 : i32
    %4 = arith.muli %c0_i32_1, %c16_i32 : i32
    %5 = tpu.assume_multiple %4, 16 : i32
    %6 = arith.index_cast %5 : i32 to index
    %c0 = arith.constant 0 : index
    %7 = vector.load %arg2[%6, %c0] : memref<16x128xf32, #tpu.memory_space<vmem>>, vector<16x128xf32>
    %8 = vector.shape_cast %7 : vector<16x128xf32> to vector<2x8x128xf32>
    %cst_2 = arith.constant dense<0.000000e+00> : vector<8x128xf32>
    %9 = vector.multi_reduction <add>, %8, %cst_2 [0] : vector<2x8x128xf32> to vector<8x128xf32>
    %10 = arith.addf %3, %9 : vector<8x128xf32>
    %c1_i32 = arith.constant 1 : i32
    %c0_3 = arith.constant 0 : index
    %c0_4 = arith.constant 0 : index
    %11 = vector.load %arg3[%c0_3, %c0_4] : memref<8x128xf32, #tpu.memory_space<vmem>>, vector<8x128xf32>
    %12 = arith.addf %11, %10 : vector<8x128xf32>
    %c0_5 = arith.constant 0 : index
    %c0_6 = arith.constant 0 : index
    %13 = vector.load %arg3[%c0_5, %c0_6] : memref<8x128xf32, #tpu.memory_space<vmem>>, vector<8x128xf32>
    tpu.vector_store %arg3[%c0_5, %c0_6], %12 {strides = array<i32>} : memref<8x128xf32, #tpu.memory_space<vmem>>, vector<8x128xf32>,
    return
  }
  func.func @transform_0(%arg0: i32, %arg1: i32) -> (i32, i32) {
    %c1_i32 = arith.constant 1 : i32
    %0 = arith.muli %arg0, %c1_i32 : i32
    %1 = arith.addi %0, %arg1 : i32
    %c0_i32 = arith.constant 0 : i32
    %2 = arith.minsi %1, %c0_i32 : i32
    %c0_i32_0 = arith.constant 0 : i32
    %c0_i32_1 = arith.constant 0 : i32
    return %2, %c0_i32_0 : i32, i32
  }
  func.func @transform_1(%arg0: i32, %arg1: i32) -> (i32, i32) {
    %c0_i32 = arith.constant 0 : i32
    %c0_i32_0 = arith.constant 0 : i32
    return %arg0, %c0_i32 : i32, i32
  }
}

</mosaic_0001>

<bundles_post_ra>
// kernel: tpu_custom_call.1
= control target key start
LH: loop header
LB: loop body
LE: loop exit
PB: predicated region body
PF: predicated region fallthrough
CT: control target
= control target key end

     0   :  { %6 = vsyncpa [#allocation3], 0  ;;  %s153_s0 = inlined_call_operand.hbm [shape: f32[16,128], index: 0, kind: input, shape index: {}]   ;;  %s154_s1 = inlined_call_operand.hbm [shape: f32[8,128], index: 1, kind: output, shape index: {}]  }
   0x1   :  { %7 = vsyncpa [#allocation4], 0  ;;  %s115_s6 = smov [#allocation2]   ;;  %s67_s10 = scalar_lea.hbm %s153_s0, 256 }
   0x2   :  { %s19_s7 = sshll.u32 %s115_s6, 4  ;;  %p68_p0 = scmp.ne.s32.totalorder %s153_s0, %s67_s10  ;;  %s20_s7 = int_to_ptr.vmem [resolvable:$true] %s19_s7 }
   0x3   :  { %p71_p1 = scmp.lt.u32.totalorder %s67_s10, %s153_s0 }
   0x5   :  { %p73_p2 = pnand %p71_p1, %p68_p0 }
   0x7   :  { %76 = shalt.err (!%p73_p2)
}
   0x8   :  { %s77_s15 = scalar_lea.vmem %s20_s7, 256  ;;  %p82_p4 = scmp.lt.s32.totalorder %s20_s7, %s20_s7 }
   0x9   :  { %p78_p3 = scmp.ne.s32.totalorder %s20_s7, %s77_s15  ;;  %p83_p5 = scmp.lt.s32.totalorder %s77_s15, %s77_s15 }
   0xb   :  { %p84_p6 = por %p83_p5, %p82_p4 }
   0xd   :  { %p85_p7 = pnand %p84_p6, %p78_p3 }
   0xf   :  { %88 = shalt.err (!%p85_p7)
}
  0x10   :  { %s116_s16 = smov 128   ;;  %s117_s17 = smov 8  }
  0x11   :  { %25 = dma.hbm_to_vmem [thread:$0]  %s153_s0, 256, %s20_s7, [#allocation3], %s116_s16, %s116_s16, %s117_s17  }
  0x12   :  { %111 = dma.done.wait [#allocation3], 256  }
  0x13   :  { %112 = vsyncadd [#allocation3], 4294967040  ;;  %v38_v0 = vld [vmem:[#allocation2] sm:$0xff]  ;;  %v39_v1 = vld [vmem:[#allocation2 + $0x8] sm:$0xff]  ;;  %s118_s20 = smov [#allocation5]  }
  0x14   :  { %s51_s21 = sshll.u32 %s118_s20, 4  ;;  %v40_v2 = vadd.f32 %v39_v1, %v38_v0  ;;  %s52_s21 = int_to_ptr.vmem [resolvable:$true] %s51_s21 }
  0x15   :  { %s89_s22 = scalar_lea.vmem %s52_s21, 128  ;;  %p94_p9 = scmp.lt.s32.totalorder %s52_s21, %s52_s21 }
  0x16   :  { %44 = vst [vmem:[#allocation5] sm:$0xff] %v40_v2  ;;  %p90_p8 = scmp.ne.s32.totalorder %s52_s21, %s89_s22  ;;  %p95_p10 = scmp.lt.s32.totalorder %s89_s22, %s89_s22 }
  0x18   :  { %p96_p11 = por %p95_p10, %p94_p9 }
  0x1a   :  { %p97_p12 = pnand %p96_p11, %p90_p8 }
  0x1c   :  { %100 = shalt.err (!%p97_p12)
}
  0x1d   :  { %s101_s0 = scalar_lea.hbm %s154_s1, 128 }
  0x1e   :  { %p102_p13 = scmp.ne.s32.totalorder %s154_s1, %s101_s0  ;;  %p105_p0 = scmp.lt.u32.totalorder %s101_s0, %s154_s1 }
  0x20   :  { %p107_p1 = pnand %p105_p0, %p102_p13 }
  0x22   :  { %110 = shalt.err (!%p107_p1)
}
  0x23   :  { %54 = dma.vmem_to_hbm [thread:$0]  %s52_s21, 128, %s154_s1, [#allocation4]  }
  0x24   :  { %113 = dma.done.wait [#allocation4], 128  }
  0x25   :  { %114 = vsyncadd [#allocation4], 4294967168 }
  0x26   :  { %58 = vsyncpa [#allocation3], 1 }
  0x27   :  { %59 = vsyncpa [#allocation4], 1 }

</bundles_post_ra>
